<compile_context>
chip_gen: v7x
topology: tpu7x:2x2x1
jax: 0.10.0
libtpu: 0.0.40
codegen_flags: <defaults>
</compile_context>

<pallas_src>
import functools

import jax
import jax.numpy as jnp
from jax.experimental import pallas as pl
from jax.experimental.pallas import tpu as pltpu

_LANE = 128
_SUBLANE = 8


def _round_up(x, m):
    return (x + m - 1) // m * m


def _pad_2d(x, rows, cols):
    r, c = x.shape
    return jnp.pad(x, ((0, rows - r), (0, cols - c)))


def _gnn_tile_kernel(sel_ref, ids_ref, table_ref, w1_ref, b1_ref, w2_ref,
                     b2_ref, scores_ref):
    """One N-tile of: embedding row gather + 2-layer MLP classifier.

    sel_ref    : SMEM (num_tiles,) int32  scalar-prefetch per-tile entity-kind selector
                                          (consumed by the index_maps, unused in the body)
    ids_ref    : VMEM (TILE_N, 1) int32
    table_ref  : VMEM (Vp, Dp)    bf16    (row 0 is the zeroed padding_idx row)
    w1_ref     : VMEM (Dp, Hp)    bf16 ;  b1_ref : (1, Hp) f32
    w2_ref     : VMEM (Hp, Cp)    bf16 ;  b2_ref : (1, Cp) f32
    scores_ref : VMEM (TILE_N, Cp) f32    lane-dense padded classifier scores
    """
    del sel_ref
    ids = ids_ref[...]                                    # (TILE_N, 1) int32
    tile_n = ids.shape[0]
    vocab, dp = table_ref.shape

    # Embedding gather from the tiny VMEM-resident table: select-accumulate over the
    # (static, small) vocabulary.  Replaces the old (N, V) one-hot + K=V MXU matmul.
    emb = jnp.zeros((tile_n, dp), jnp.float32)
    for row in range(vocab):                              # static, unrolled (V <= 8)
        mask = (ids == row).astype(jnp.float32)           # (TILE_N, 1)
        row_vec = table_ref[row:row + 1, :].astype(jnp.float32)   # (1, Dp)
        emb = emb + mask * row_vec

    # TODO(synk): MPNN message passing (MPNN_DICT internals not provided in the reference
    # source) would transform `emb` here; treated as identity (num_mpnns no-op passes).

    h = jnp.dot(emb.astype(w1_ref.dtype), w1_ref[...],
                preferred_element_type=jnp.float32) + b1_ref[...]
    h = jnp.maximum(h, 0.0)                               # ReLU (f32 on the VPU)
    scores_ref[...] = jnp.dot(h.astype(w2_ref.dtype), w2_ref[...],
                              preferred_element_type=jnp.float32) + b2_ref[...]


def _fused_embed_classify(sel, ids_padded, tables, w1s, b1s, w2s, b2s, *, tile_n):
    """Single fused launch over node tiles followed by edge tiles."""
    n_total = ids_padded.shape[0]
    num_tiles = n_total // tile_n
    _, vp, dp = tables.shape
    hp = w1s.shape[2]
    cp = w2s.shape[2]

    def per_tile(i, sel_ref):            # ids / scores: tile i along rows
        return (i, 0)

    def per_kind(i, sel_ref):            # weights: pick node(0) / edge(1) slab for this tile
        return (sel_ref[i], 0, 0)

    grid_spec = pltpu.PrefetchScalarGridSpec(
        num_scalar_prefetch=1,
        grid=(num_tiles,),
        in_specs=[
            pl.BlockSpec((tile_n, 1), per_tile),          # ids
            pl.BlockSpec((None, vp, dp), per_kind),       # embedding table
            pl.BlockSpec((None, dp, hp), per_kind),       # w1
            pl.BlockSpec((None, 1, hp), per_kind),        # b1
            pl.BlockSpec((None, hp, cp), per_kind),       # w2
            pl.BlockSpec((None, 1, cp), per_kind),        # b2
        ],
        out_specs=pl.BlockSpec((tile_n, cp), per_tile),
    )

    return pl.pallas_call(
        _gnn_tile_kernel,
        grid_spec=grid_spec,
        out_shape=jax.ShapeDtypeStruct((n_total, cp), jnp.float32),
        compiler_params=pltpu.CompilerParams(
            dimension_semantics=("parallel",)),
    )(sel, ids_padded, tables, w1s, b1s, w2s, b2s)


def graphnn_forward(node_type_ids, edge_type_ids, params, *, tile_n_max=512):
    """Mirrors GraphNN.forward for a batched graph with only 'node_type'/'edge_type' data."""
    n_nodes = node_type_ids.shape[0]
    n_edges = edge_type_ids.shape[0]
    num_node_types = params["node_cls_w2"].shape[1]
    num_edge_types = params["edge_cls_w2"].shape[1]

    # Common padded geometry: lane-dense (128) features / hidden / classes, sublane vocab.
    dp = _round_up(max(params["node_emb_table"].shape[1],
                       params["edge_emb_table"].shape[1]), _LANE)
    hp = _round_up(max(params["node_cls_w1"].shape[1],
                       params["edge_cls_w1"].shape[1]), _LANE)
    cp = _round_up(max(num_node_types, num_edge_types), _LANE)
    vp = _round_up(max(params["node_emb_table"].shape[0],
                       params["edge_emb_table"].shape[0]), _SUBLANE)

    compute_dtype = jnp.bfloat16   # MXU operands; biases / accumulation stay f32

    tables = jnp.stack([_pad_2d(params["node_emb_table"], vp, dp),
                        _pad_2d(params["edge_emb_table"], vp, dp)]).astype(compute_dtype)
    w1s = jnp.stack([_pad_2d(params["node_cls_w1"], dp, hp),
                     _pad_2d(params["edge_cls_w1"], dp, hp)]).astype(compute_dtype)
    b1s = jnp.stack([_pad_2d(params["node_cls_b1"], 1, hp),
                     _pad_2d(params["edge_cls_b1"], 1, hp)]).astype(jnp.float32)
    w2s = jnp.stack([_pad_2d(params["node_cls_w2"], hp, cp),
                     _pad_2d(params["edge_cls_w2"], hp, cp)]).astype(compute_dtype)
    b2s = jnp.stack([_pad_2d(params["node_cls_b2"], 1, cp),
                     _pad_2d(params["edge_cls_b2"], 1, cp)]).astype(jnp.float32)

    # Row tiling: multiple of 8 sublanes, capped so everything pipelines for large graphs.
    tile_n = min(tile_n_max, _round_up(max(n_nodes, n_edges, 1), _SUBLANE))
    n_node_pad = _round_up(max(n_nodes, 1), tile_n)
    n_edge_pad = _round_up(max(n_edges, 1), tile_n)

    node_ids_p = jnp.pad(node_type_ids.astype(jnp.int32),
                         ((0, n_node_pad - n_nodes), (0, 0)))
    edge_ids_p = jnp.pad(edge_type_ids.astype(jnp.int32),
                         ((0, n_edge_pad - n_edges), (0, 0)))
    ids_padded = jnp.concatenate([node_ids_p, edge_ids_p], axis=0)

    num_node_tiles = n_node_pad // tile_n
    num_edge_tiles = n_edge_pad // tile_n
    sel = jnp.concatenate([jnp.zeros((num_node_tiles,), jnp.int32),
                           jnp.ones((num_edge_tiles,), jnp.int32)])

    scores = _fused_embed_classify(sel, ids_padded, tables, w1s, b1s, w2s, b2s,
                                   tile_n=tile_n)

    node_scores = scores[:n_nodes, :num_node_types]
    edge_scores = scores[n_node_pad:n_node_pad + n_edges, :num_edge_types]

    batch_init_graph = {}   # ndata['nodes'] / edata['edge_spans'] are deleted in project_output
    batch_scores_graph = {
        "ndata": {"node_type": node_scores},
        "edata": {"edge_type": edge_scores},
    }
    graph_property_scores = {}   # predict_graph_properties == False
    return batch_init_graph, batch_scores_graph, graph_property_scores


def make_params(key, *, dim_h, dim_k, num_node_types, num_edge_types):
    """Deterministic synthetic parameters matching the module __init__ shapes (f32)."""
    ks = jax.random.split(key, 10)
    nph_dim = dim_h // 2
    eph_dim = (dim_h * dim_k) // 2

    node_table = 0.1 * jax.random.normal(ks[0], (num_node_types + 2, dim_h), jnp.float32)
    node_table = node_table.at[0].set(0.0)   # padding_idx row zeroed, like nn.Embedding
    edge_table = 0.1 * jax.random.normal(ks[1], (num_edge_types + 2, dim_h * dim_k), jnp.float32)
    edge_table = edge_table.at[0].set(0.0)   # no_edge_present_type == 'zeros'

    return {
        "node_emb_table": node_table,
        "edge_emb_table": edge_table,
        "node_cls_w1": 0.1 * jax.random.normal(ks[2], (dim_h, nph_dim), jnp.float32),
        "node_cls_b1": 0.1 * jax.random.normal(ks[3], (1, nph_dim), jnp.float32),
        "node_cls_w2": 0.1 * jax.random.normal(ks[4], (nph_dim, num_node_types), jnp.float32),
        "node_cls_b2": 0.1 * jax.random.normal(ks[5], (1, num_node_types), jnp.float32),
        "edge_cls_w1": 0.1 * jax.random.normal(ks[6], (dim_h * dim_k, eph_dim), jnp.float32),
        "edge_cls_b1": 0.1 * jax.random.normal(ks[7], (1, eph_dim), jnp.float32),
        "edge_cls_w2": 0.1 * jax.random.normal(ks[8], (eph_dim, num_edge_types), jnp.float32),
        "edge_cls_b2": 0.1 * jax.random.normal(ks[9], (1, num_edge_types), jnp.float32),
    }


def _reference_scores(ids, table, w1, b1, w2, b2, compute_dtype=jnp.bfloat16):
    """Pure-JAX reference at the same operand precision as the kernel."""
    emb = jnp.take(table.astype(compute_dtype).astype(jnp.float32), ids[:, 0], axis=0)
    h = jnp.dot(emb.astype(compute_dtype), w1.astype(compute_dtype),
                preferred_element_type=jnp.float32) + b1.astype(jnp.float32)
    h = jnp.maximum(h, 0.0)
    return jnp.dot(h.astype(compute_dtype), w2.astype(compute_dtype),
                   preferred_element_type=jnp.float32) + b2.astype(jnp.float32)


if __name__ == "__main__":
    # Small synthetic configuration.
    dim_h = 32
    dim_k = 4
    num_node_types = 5
    num_edge_types = 3
    n_nodes = 16          # total nodes in the batched graph
    n_edges = 32          # total edges in the batched graph

    key = jax.random.PRNGKey(0)
    k_params, k_nid, k_eid = jax.random.split(key, 3)

    params = make_params(k_params, dim_h=dim_h, dim_k=dim_k,
                         num_node_types=num_node_types,
                         num_edge_types=num_edge_types)

    # ids in [1, num_types] (0 is the padding index).
    node_type_ids = jax.random.randint(k_nid, (n_nodes, 1), 1, num_node_types + 1, jnp.int32)
    edge_type_ids = jax.random.randint(k_eid, (n_edges, 1), 1, num_edge_types + 1, jnp.int32)

    fwd = jax.jit(functools.partial(graphnn_forward, tile_n_max=512))
    _, scores_graph, graph_property_scores = fwd(node_type_ids, edge_type_ids, params)
    node_scores = jax.block_until_ready(scores_graph["ndata"]["node_type"])
    edge_scores = jax.block_until_ready(scores_graph["edata"]["edge_type"])

    # Correctness vs. a pure-JAX reference at matching (bf16 operand / f32 accum) precision.
    ref_node = _reference_scores(node_type_ids, params["node_emb_table"],
                                 params["node_cls_w1"], params["node_cls_b1"],
                                 params["node_cls_w2"], params["node_cls_b2"])
    ref_edge = _reference_scores(edge_type_ids, params["edge_emb_table"],
                                 params["edge_cls_w1"], params["edge_cls_b1"],
                                 params["edge_cls_w2"], params["edge_cls_b2"])

    assert node_scores.shape == (n_nodes, num_node_types)
    assert edge_scores.shape == (n_edges, num_edge_types)
    assert graph_property_scores == {}
    assert bool(jnp.allclose(node_scores, ref_node, atol=2e-2, rtol=2e-2))
    assert bool(jnp.allclose(edge_scores, ref_edge, atol=2e-2, rtol=2e-2))
    print("KERNEL_OK")
</pallas_src>

<mosaic_0001>
module attributes {stable_mosaic.version = 11 : i64} {
  func.func @_gnn_tile_kernel(%arg0: i32, %arg1: memref<2xi32, #tpu.memory_space<smem>>, %arg2: memref<32x1xi32, #tpu.memory_space<vmem>>, %arg3: memref<1x8x128xbf16, #tpu.memory_space<vmem>>, %arg4: memref<1x128x128xbf16, #tpu.memory_space<vmem>>, %arg5: memref<1x1x128xf32, #tpu.memory_space<vmem>>, %arg6: memref<1x128x128xbf16, #tpu.memory_space<vmem>>, %arg7: memref<1x1x128xf32, #tpu.memory_space<vmem>>, %arg8: memref<32x128xf32, #tpu.memory_space<vmem>>) attributes {dimension_semantics = [#tpu.dimension_semantics<parallel>], iteration_bounds = array<i64: 2>, scalar_prefetch = 1 : i64, scratch_operands = 0 : i64, tpu.core_type = #tpu.core_type<tc>, window_params = [{transform_indices = @transform_0, window_bounds = array<i64: 32, 1>}, {transform_indices = @transform_1, window_bounds = array<i64: 1, 8, 128>}, {transform_indices = @transform_2, window_bounds = array<i64: 1, 128, 128>}, {transform_indices = @transform_3, window_bounds = array<i64: 1, 1, 128>}, {transform_indices = @transform_4, window_bounds = array<i64: 1, 128, 128>}, {transform_indices = @transform_5, window_bounds = array<i64: 1, 1, 128>}, {transform_indices = @transform_6, window_bounds = array<i64: 32, 128>}]} {
    %c0 = arith.constant 0 : index
    %c0_0 = arith.constant 0 : index
    %0 = vector.load %arg2[%c0, %c0_0] : memref<32x1xi32, #tpu.memory_space<vmem>>, vector<32x1xi32>
    %cst = arith.constant 0.000000e+00 : f32
    %1 = vector.broadcast %cst : f32 to vector<32x128xf32>
    %c0_i32 = arith.constant 0 : i32
    %2 = vector.broadcast %c0_i32 : i32 to vector<32x1xi32>
    %3 = arith.cmpi eq, %0, %2 : vector<32x1xi32>
    %4 = arith.extui %3 : vector<32x1xi1> to vector<32x1xi32>
    %5 = arith.sitofp %4 : vector<32x1xi32> to vector<32x1xf32>
    %c0_1 = arith.constant 0 : index
    %c0_2 = arith.constant 0 : index
    %c0_3 = arith.constant 0 : index
    %6 = vector.load %arg3[%c0_1, %c0_2, %c0_3] : memref<1x8x128xbf16, #tpu.memory_space<vmem>>, vector<1x1x128xbf16>
    %7 = vector.shape_cast %6 : vector<1x1x128xbf16> to vector<1x128xbf16>
    %8 = arith.extf %7 : vector<1x128xbf16> to vector<1x128xf32>
    %9 = vector.broadcast %5 : vector<32x1xf32> to vector<32x128xf32>
    %10 = vector.broadcast %8 : vector<1x128xf32> to vector<32x128xf32>
    %11 = arith.mulf %9, %10 : vector<32x128xf32>
    %12 = arith.addf %1, %11 : vector<32x128xf32>
    %c1_i32 = arith.constant 1 : i32
    %13 = vector.broadcast %c1_i32 : i32 to vector<32x1xi32>
    %14 = arith.cmpi eq, %0, %13 : vector<32x1xi32>
    %15 = arith.extui %14 : vector<32x1xi1> to vector<32x1xi32>
    %16 = arith.sitofp %15 : vector<32x1xi32> to vector<32x1xf32>
    %c0_4 = arith.constant 0 : index
    %c1 = arith.constant 1 : index
    %c0_5 = arith.constant 0 : index
    %17 = vector.load %arg3[%c0_4, %c1, %c0_5] : memref<1x8x128xbf16, #tpu.memory_space<vmem>>, vector<1x1x128xbf16>
    %18 = vector.shape_cast %17 : vector<1x1x128xbf16> to vector<1x128xbf16>
    %19 = arith.extf %18 : vector<1x128xbf16> to vector<1x128xf32>
    %20 = vector.broadcast %16 : vector<32x1xf32> to vector<32x128xf32>
    %21 = vector.broadcast %19 : vector<1x128xf32> to vector<32x128xf32>
    %22 = arith.mulf %20, %21 : vector<32x128xf32>
    %23 = arith.addf %12, %22 : vector<32x128xf32>
    %c2_i32 = arith.constant 2 : i32
    %24 = vector.broadcast %c2_i32 : i32 to vector<32x1xi32>
    %25 = arith.cmpi eq, %0, %24 : vector<32x1xi32>
    %26 = arith.extui %25 : vector<32x1xi1> to vector<32x1xi32>
    %27 = arith.sitofp %26 : vector<32x1xi32> to vector<32x1xf32>
    %c0_6 = arith.constant 0 : index
    %c2 = arith.constant 2 : index
    %c0_7 = arith.constant 0 : index
    %28 = vector.load %arg3[%c0_6, %c2, %c0_7] : memref<1x8x128xbf16, #tpu.memory_space<vmem>>, vector<1x1x128xbf16>
    %29 = vector.shape_cast %28 : vector<1x1x128xbf16> to vector<1x128xbf16>
    %30 = arith.extf %29 : vector<1x128xbf16> to vector<1x128xf32>
    %31 = vector.broadcast %27 : vector<32x1xf32> to vector<32x128xf32>
    %32 = vector.broadcast %30 : vector<1x128xf32> to vector<32x128xf32>
    %33 = arith.mulf %31, %32 : vector<32x128xf32>
    %34 = arith.addf %23, %33 : vector<32x128xf32>
    %c3_i32 = arith.constant 3 : i32
    %35 = vector.broadcast %c3_i32 : i32 to vector<32x1xi32>
    %36 = arith.cmpi eq, %0, %35 : vector<32x1xi32>
    %37 = arith.extui %36 : vector<32x1xi1> to vector<32x1xi32>
    %38 = arith.sitofp %37 : vector<32x1xi32> to vector<32x1xf32>
    %c0_8 = arith.constant 0 : index
    %c3 = arith.constant 3 : index
    %c0_9 = arith.constant 0 : index
    %39 = vector.load %arg3[%c0_8, %c3, %c0_9] : memref<1x8x128xbf16, #tpu.memory_space<vmem>>, vector<1x1x128xbf16>
    %40 = vector.shape_cast %39 : vector<1x1x128xbf16> to vector<1x128xbf16>
    %41 = arith.extf %40 : vector<1x128xbf16> to vector<1x128xf32>
    %42 = vector.broadcast %38 : vector<32x1xf32> to vector<32x128xf32>
    %43 = vector.broadcast %41 : vector<1x128xf32> to vector<32x128xf32>
    %44 = arith.mulf %42, %43 : vector<32x128xf32>
    %45 = arith.addf %34, %44 : vector<32x128xf32>
    %c4_i32 = arith.constant 4 : i32
    %46 = vector.broadcast %c4_i32 : i32 to vector<32x1xi32>
    %47 = arith.cmpi eq, %0, %46 : vector<32x1xi32>
    %48 = arith.extui %47 : vector<32x1xi1> to vector<32x1xi32>
    %49 = arith.sitofp %48 : vector<32x1xi32> to vector<32x1xf32>
    %c0_10 = arith.constant 0 : index
    %c4 = arith.constant 4 : index
    %c0_11 = arith.constant 0 : index
    %50 = vector.load %arg3[%c0_10, %c4, %c0_11] : memref<1x8x128xbf16, #tpu.memory_space<vmem>>, vector<1x1x128xbf16>
    %51 = vector.shape_cast %50 : vector<1x1x128xbf16> to vector<1x128xbf16>
    %52 = arith.extf %51 : vector<1x128xbf16> to vector<1x128xf32>
    %53 = vector.broadcast %49 : vector<32x1xf32> to vector<32x128xf32>
    %54 = vector.broadcast %52 : vector<1x128xf32> to vector<32x128xf32>
    %55 = arith.mulf %53, %54 : vector<32x128xf32>
    %56 = arith.addf %45, %55 : vector<32x128xf32>
    %c5_i32 = arith.constant 5 : i32
    %57 = vector.broadcast %c5_i32 : i32 to vector<32x1xi32>
    %58 = arith.cmpi eq, %0, %57 : vector<32x1xi32>
    %59 = arith.extui %58 : vector<32x1xi1> to vector<32x1xi32>
    %60 = arith.sitofp %59 : vector<32x1xi32> to vector<32x1xf32>
    %c0_12 = arith.constant 0 : index
    %c5 = arith.constant 5 : index
    %c0_13 = arith.constant 0 : index
    %61 = vector.load %arg3[%c0_12, %c5, %c0_13] : memref<1x8x128xbf16, #tpu.memory_space<vmem>>, vector<1x1x128xbf16>
    %62 = vector.shape_cast %61 : vector<1x1x128xbf16> to vector<1x128xbf16>
    %63 = arith.extf %62 : vector<1x128xbf16> to vector<1x128xf32>
    %64 = vector.broadcast %60 : vector<32x1xf32> to vector<32x128xf32>
    %65 = vector.broadcast %63 : vector<1x128xf32> to vector<32x128xf32>
    %66 = arith.mulf %64, %65 : vector<32x128xf32>
    %67 = arith.addf %56, %66 : vector<32x128xf32>
    %c6_i32 = arith.constant 6 : i32
    %68 = vector.broadcast %c6_i32 : i32 to vector<32x1xi32>
    %69 = arith.cmpi eq, %0, %68 : vector<32x1xi32>
    %70 = arith.extui %69 : vector<32x1xi1> to vector<32x1xi32>
    %71 = arith.sitofp %70 : vector<32x1xi32> to vector<32x1xf32>
    %c0_14 = arith.constant 0 : index
    %c6 = arith.constant 6 : index
    %c0_15 = arith.constant 0 : index
    %72 = vector.load %arg3[%c0_14, %c6, %c0_15] : memref<1x8x128xbf16, #tpu.memory_space<vmem>>, vector<1x1x128xbf16>
    %73 = vector.shape_cast %72 : vector<1x1x128xbf16> to vector<1x128xbf16>
    %74 = arith.extf %73 : vector<1x128xbf16> to vector<1x128xf32>
    %75 = vector.broadcast %71 : vector<32x1xf32> to vector<32x128xf32>
    %76 = vector.broadcast %74 : vector<1x128xf32> to vector<32x128xf32>
    %77 = arith.mulf %75, %76 : vector<32x128xf32>
    %78 = arith.addf %67, %77 : vector<32x128xf32>
    %c7_i32 = arith.constant 7 : i32
    %79 = vector.broadcast %c7_i32 : i32 to vector<32x1xi32>
    %80 = arith.cmpi eq, %0, %79 : vector<32x1xi32>
    %81 = arith.extui %80 : vector<32x1xi1> to vector<32x1xi32>
    %82 = arith.sitofp %81 : vector<32x1xi32> to vector<32x1xf32>
    %c0_16 = arith.constant 0 : index
    %c7 = arith.constant 7 : index
    %c0_17 = arith.constant 0 : index
    %83 = vector.load %arg3[%c0_16, %c7, %c0_17] : memref<1x8x128xbf16, #tpu.memory_space<vmem>>, vector<1x1x128xbf16>
    %84 = vector.shape_cast %83 : vector<1x1x128xbf16> to vector<1x128xbf16>
    %85 = arith.extf %84 : vector<1x128xbf16> to vector<1x128xf32>
    %86 = vector.broadcast %82 : vector<32x1xf32> to vector<32x128xf32>
    %87 = vector.broadcast %85 : vector<1x128xf32> to vector<32x128xf32>
    %88 = arith.mulf %86, %87 : vector<32x128xf32>
    %89 = arith.addf %78, %88 : vector<32x128xf32>
    %90 = arith.truncf %89 : vector<32x128xf32> to vector<32x128xbf16>
    %c0_18 = arith.constant 0 : index
    %c0_19 = arith.constant 0 : index
    %c0_20 = arith.constant 0 : index
    %91 = vector.load %arg4[%c0_18, %c0_19, %c0_20] : memref<1x128x128xbf16, #tpu.memory_space<vmem>>, vector<1x128x128xbf16>
    %92 = vector.shape_cast %91 : vector<1x128x128xbf16> to vector<128x128xbf16>
    %cst_21 = arith.constant dense<0.000000e+00> : vector<32x128xf32>
    %93 = tpu.matmul %90, %92, %cst_21 {dimension_numbers = #tpu.dot_dimension_numbers<[1], [0], [0], [1], [0, 0, 1, 1], [], []>} : vector<32x128xbf16>, vector<128x128xbf16>, vector<32x128xf32> -> vector<32x128xf32>
    %c0_22 = arith.constant 0 : index
    %c0_23 = arith.constant 0 : index
    %c0_24 = arith.constant 0 : index
    %94 = vector.load %arg5[%c0_22, %c0_23, %c0_24] : memref<1x1x128xf32, #tpu.memory_space<vmem>>, vector<1x1x128xf32>
    %95 = vector.shape_cast %94 : vector<1x1x128xf32> to vector<1x128xf32>
    %96 = vector.broadcast %95 : vector<1x128xf32> to vector<32x128xf32>
    %97 = arith.addf %93, %96 : vector<32x128xf32>
    %cst_25 = arith.constant 0.000000e+00 : f32
    %98 = vector.broadcast %cst_25 : f32 to vector<32x128xf32>
    %99 = arith.maximumf %97, %98 : vector<32x128xf32>
    %100 = arith.truncf %99 : vector<32x128xf32> to vector<32x128xbf16>
    %c0_26 = arith.constant 0 : index
    %c0_27 = arith.constant 0 : index
    %c0_28 = arith.constant 0 : index
    %101 = vector.load %arg6[%c0_26, %c0_27, %c0_28] : memref<1x128x128xbf16, #tpu.memory_space<vmem>>, vector<1x128x128xbf16>
    %102 = vector.shape_cast %101 : vector<1x128x128xbf16> to vector<128x128xbf16>
    %cst_29 = arith.constant dense<0.000000e+00> : vector<32x128xf32>
    %103 = tpu.matmul %100, %102, %cst_29 {dimension_numbers = #tpu.dot_dimension_numbers<[1], [0], [0], [1], [0, 0, 1, 1], [], []>} : vector<32x128xbf16>, vector<128x128xbf16>, vector<32x128xf32> -> vector<32x128xf32>
    %c0_30 = arith.constant 0 : index
    %c0_31 = arith.constant 0 : index
    %c0_32 = arith.constant 0 : index
    %104 = vector.load %arg7[%c0_30, %c0_31, %c0_32] : memref<1x1x128xf32, #tpu.memory_space<vmem>>, vector<1x1x128xf32>
    %105 = vector.shape_cast %104 : vector<1x1x128xf32> to vector<1x128xf32>
    %106 = vector.broadcast %105 : vector<1x128xf32> to vector<32x128xf32>
    %107 = arith.addf %103, %106 : vector<32x128xf32>
    %c0_33 = arith.constant 0 : index
    %c0_34 = arith.constant 0 : index
    %108 = vector.load %arg8[%c0_33, %c0_34] : memref<32x128xf32, #tpu.memory_space<vmem>>, vector<32x128xf32>
    tpu.vector_store %arg8[%c0_33, %c0_34], %107 {strides = array<i32>} : memref<32x128xf32, #tpu.memory_space<vmem>>, vector<32x128xf32>,
    return
  }
  func.func @transform_0(%arg0: i32, %arg1: memref<2xi32, #tpu.memory_space<smem>>) -> (i32, i32) {
    %c0_i32 = arith.constant 0 : i32
    %c0_i32_0 = arith.constant 0 : i32
    return %arg0, %c0_i32 : i32, i32
  }
  func.func @transform_1(%arg0: i32, %arg1: memref<2xi32, #tpu.memory_space<smem>>) -> (i32, i32, i32) {
    %0 = arith.index_cast %arg0 : i32 to index
    %1 = memref.load %arg1[%0] : memref<2xi32, #tpu.memory_space<smem>>
    %c0_i32 = arith.constant 0 : i32
    %c0_i32_0 = arith.constant 0 : i32
    %c0_i32_1 = arith.constant 0 : i32
    return %1, %c0_i32, %c0_i32_0 : i32, i32, i32
  }
  func.func @transform_2(%arg0: i32, %arg1: memref<2xi32, #tpu.memory_space<smem>>) -> (i32, i32, i32) {
    %0 = arith.index_cast %arg0 : i32 to index
    %1 = memref.load %arg1[%0] : memref<2xi32, #tpu.memory_space<smem>>
    %c0_i32 = arith.constant 0 : i32
    %c0_i32_0 = arith.constant 0 : i32
    %c0_i32_1 = arith.constant 0 : i32
    return %1, %c0_i32, %c0_i32_0 : i32, i32, i32
  }
  func.func @transform_3(%arg0: i32, %arg1: memref<2xi32, #tpu.memory_space<smem>>) -> (i32, i32, i32) {
    %0 = arith.index_cast %arg0 : i32 to index
    %1 = memref.load %arg1[%0] : memref<2xi32, #tpu.memory_space<smem>>
    %c0_i32 = arith.constant 0 : i32
    %c0_i32_0 = arith.constant 0 : i32
    %c0_i32_1 = arith.constant 0 : i32
    return %1, %c0_i32, %c0_i32_0 : i32, i32, i32
  }
  func.func @transform_4(%arg0: i32, %arg1: memref<2xi32, #tpu.memory_space<smem>>) -> (i32, i32, i32) {
    %0 = arith.index_cast %arg0 : i32 to index
    %1 = memref.load %arg1[%0] : memref<2xi32, #tpu.memory_space<smem>>
    %c0_i32 = arith.constant 0 : i32
    %c0_i32_0 = arith.constant 0 : i32
    %c0_i32_1 = arith.constant 0 : i32
    return %1, %c0_i32, %c0_i32_0 : i32, i32, i32
  }
  func.func @transform_5(%arg0: i32, %arg1: memref<2xi32, #tpu.memory_space<smem>>) -> (i32, i32, i32) {
    %0 = arith.index_cast %arg0 : i32 to index
    %1 = memref.load %arg1[%0] : memref<2xi32, #tpu.memory_space<smem>>
    %c0_i32 = arith.constant 0 : i32
    %c0_i32_0 = arith.constant 0 : i32
    %c0_i32_1 = arith.constant 0 : i32
    return %1, %c0_i32, %c0_i32_0 : i32, i32, i32
  }
  func.func @transform_6(%arg0: i32, %arg1: memref<2xi32, #tpu.memory_space<smem>>) -> (i32, i32) {
    %c0_i32 = arith.constant 0 : i32
    %c0_i32_0 = arith.constant 0 : i32
    return %arg0, %c0_i32 : i32, i32
  }
}

</mosaic_0001>

<bundles_post_ra>
// kernel: graphnn_forward.1
= control target key start
LH: loop header
LB: loop body
LE: loop exit
PB: predicated region body
PF: predicated region fallthrough
CT: control target
= control target key end

     0   :  { %s1575_s0 = inlined_call_operand.vmem [shape: s32[2], index: 0, kind: input, shape index: {}]   ;;  %s1576_s1 = inlined_call_operand.vmem [shape: s32[64,1], index: 1, kind: input, shape index: {}]   ;;  %s1577_s2 = inlined_call_operand.vmem [shape: bf16[2,8,128], index: 2, kind: input, shape index: {}]   ;;  %s1578_s3 = inlined_call_operand.vmem [shape: bf16[2,128,128], index: 3, kind: input, shape index: {}]   ;;  %s1579_s4 = inlined_call_operand.vmem [shape: f32[2,1,128], index: 4, kind: input, shape index: {}]   ;;  %s1580_s5 = inlined_call_operand.vmem [shape: bf16[2,128,128], index: 5, kind: input, shape index: {}]   ;;  %s1581_s6 = inlined_call_operand.vmem [shape: f32[2,1,128], index: 6, kind: input, shape index: {}]   ;;  %s1582_s7 = inlined_call_operand.vmem [shape: f32[64,128], index: 7, kind: output, shape index: {}]  }
   0x1   :  { %s12_s26 = sshll.u32 %s1575_s0, 4  ;;  %s13_s26 = int_to_ptr.vmem [resolvable:$true] %s12_s26 }
   0x2   :  { %s1346_s27 = scalar_lea.vmem %s13_s26, 16  ;;  %p1351_p1 = scmp.lt.s32.totalorder %s13_s26, %s13_s26 }
   0x3   :  { %p1347_p0 = scmp.ne.s32.totalorder %s13_s26, %s1346_s27  ;;  %p1352_p2 = scmp.lt.s32.totalorder %s1346_s27, %s1346_s27 }
   0x5   :  { %p1353_p3 = por %p1352_p2, %p1351_p1 }
   0x7   :  { %p1354_p4 = pnand %p1353_p3, %p1347_p0 }
   0x9   :  { %1357 = shalt.err (!%p1354_p4)  }
   0xa   :  { %s1368_s28 = smov [#allocation3]  }
   0xb   :  { %15 = dma.vmem_to_smem %s13_s26, 16, %s1368_s28, [#allocation2] }
   0xc   :  { %1362 = dma.done.wait [#allocation2], 16 }
   0xd   :  { %1363 = vsyncadd [#allocation2], 4294967280 }
   0xe   :  { %17 = sfence }
   0xf   :  { %s1414_s29 = smov 0  }
  0x10 LB: > { %s1420_s0 = sadd.s32 4294967295, %s1366_s29   ;;  %p1113_p5 = scmp.ge.s32.totalorder %s1366_s29, 1  ;;  %s1366_s29 = sphi %s1414_s29, %s23_s29  }
  0x11   : > { %p285_p6 = scmp.lt.s32.totalorder %s1366_s29, 3 }
  0x13   : > { %p286_p7 = pnand %p1113_p5, %p285_p6 }
  0x14   : > { %s1114_s30 = sshll.u32 (!%p286_p7), %s1420_s0, 2  ;;  %v1369_v0 = vmov (!%p286_p7), 0   ;;  %s1428_s8 = sld [smem:[#allocation3 + %s1420_s0]] (!%p286_p7)  ;;  %v1370_v5 = vmov (!%p286_p7), 0.0  }
  0x15   : > { %289 = sbr.rel (%p286_p7) target bundleno = 642 (0x282), region = 44  ;;  %1259 = vset.pattern.permute.xlu1 (!%p286_p7), %v1369_v0  ;;  %1248 = vset.pattern.permute.xlu0 (!%p286_p7), %v1369_v0  ;;  %p341_p8 = scmp.lt.s32.totalorder (!%p286_p7), %s1114_s30, 7 }
  0x16   : > { %s364_s17 = sld [smem:[#allocation3 + %s1420_s0]] (!%p286_p7) }
  0x17   : > { %s346_s22 = sld [smem:[#allocation3 + %s1420_s0]] (!%p286_p7) }
  0x18   : > { %s359_s27 = sld [smem:[#allocation3 + %s1420_s0]] (!%p286_p7) }
  0x19   : > { %s371_s11 = sld [smem:[#allocation3 + %s1420_s0]] (!%p286_p7) }
  0x1a   : > { %p353_p9 = scmp.lt.s32.totalorder (!%p286_p7), %s1428_s8, 1 }
  0x1c   : > { %s1584_s30 = smov (!%p341_p8, %s1114_s30), 7  ;;  %s1586_s8 = smov (!%p353_p9, %s1428_s8), 1 }
  0x1d   : > { %s1115_s9 = sshll.u32 %s1584_s30, 3  ;;  %s1175_s13 = sshll.u32 %s1586_s8, 6 }
  0x1e   : > { %s344_s12 = scalar_lea.vmem %s1576_s1, %s1115_s9  ;;  %s1475_s16 = scalar_lea.vmem %s1578_s3, %s1175_s13 }
  0x1f   : > { %v1436_v1 = vld [vmem:[%s344_s12 + $0x10] sm:$0xff]  ;;  %v1438_v2 = vld [vmem:[%s344_s12 + $0x18] sm:$0xff]  ;;  %v1440_v3 = vld [vmem:[%s344_s12] sm:$0xff]  ;;  %p365_p10 = scmp.lt.s32.totalorder %s364_s17, 1  ;;  %p347_p11 = scmp.lt.s32.totalorder %s346_s22, 1 }
  0x20   : > { %vm389_vm0 = vcmp.eq.s32.totalorder %v1436_v1, 0  ;;  %vm390_vm1 = vcmp.eq.s32.totalorder %v1438_v2, 0  ;;  %v1444_v4 = vld [vmem:[%s344_s12 + $0x8] sm:$0xff]  ;;  %vm387_vm2 = vcmp.eq.s32.totalorder %v1440_v3, 0  ;;  %vm435_vm3 = vcmp.eq.s32.totalorder %v1436_v1, 1  ;;  %v1330_v23 = vld [vmem:[%s1475_s16] sm:$0xff]  }
  0x21   : > { %v1125_v6 = vsel %vm389_vm0, 1.0, %v1370_v5  ;;  %v1126_v7 = vsel %vm390_vm1, 1.0, %v1370_v5  ;;  %vm388_vm4 = vcmp.eq.s32.totalorder %v1444_v4, 0  ;;  %v1123_v8 = vsel %vm387_vm2, 1.0, %v1370_v5  ;;  %1197 = vmatprep.subr.bf16.mxu0 %v1330_v23  ;;  %v1331_v30 = vld [vmem:[%s1475_s16 + $0x8] sm:$0xff]   ;;  %v1332_v38 = vld [vmem:[%s1475_s16 + $0x10] sm:$0xff]  }
  0x22   : > { %v1260_v9 = vpack.i.bf16 %v1126_v7, %v1125_v6  ;;  %v1124_v10 = vsel %vm388_vm4, 1.0, %v1370_v5  ;;  %vm436_vm5 = vcmp.eq.s32.totalorder %v1438_v2, 1  ;;  %v1129_v11 = vsel %vm435_vm3, 1.0, %v1370_v5  ;;  %1198 = vmatpush3.bf16.msra.mxu0 %v1330_v23  ;;  %v1333_v47 = vld [vmem:[%s1475_s16 + $0x18] sm:$0xff]   ;;  %v1334_v51 = vld [vmem:[%s1475_s16 + $0x20] sm:$0xff]   ;;  %v1335_v58 = vld [vmem:[%s1475_s16 + $0x28] sm:$0xff]  }
  0x23   : > { %v1249_v12 = vpack.i.bf16 %v1124_v10, %v1123_v8  ;;  %v1130_v13 = vsel %vm436_vm5, 1.0, %v1370_v5  ;;  %vm433_vm6 = vcmp.eq.s32.totalorder %v1440_v3, 1  ;;  %vm434_vm7 = vcmp.eq.s32.totalorder %v1444_v4, 1  ;;  %1199 = vmatprep.subr.bf16.mxu0 %v1331_v30  ;;  %v1336_v60 = vld [vmem:[%s1475_s16 + $0x30] sm:$0xff]   ;;  %v1337_v61 = vld [vmem:[%s1475_s16 + $0x38] sm:$0xff]   ;;  %s1588_s17 = smov (!%p365_p10, %s364_s17), 1 }
  0x24   : > { %1261 = vperm.xlu1 %1259, %v1260_v9   ;;  %v1265_v14 = vpack.i.bf16 %v1130_v13, %v1129_v11  ;;  %v1127_v15 = vsel %vm433_vm6, 1.0, %v1370_v5  ;;  %v1128_v16 = vsel %vm434_vm7, 1.0, %v1370_v5  ;;  %vm479_vm8 = vcmp.eq.s32.totalorder %v1436_v1, 2  ;;  %s1176_s18 = sshll.u32 %s1588_s17, 6  ;;  %s1590_s22 = smov (!%p347_p11, %s346_s22), 1 }
  0x25   : > { %1250 = vperm.xlu0 %1248, %v1249_v12   ;;  %v1254_v17 = vpack.i.bf16 %v1128_v16, %v1127_v15  ;;  %vm480_vm9 = vcmp.eq.s32.totalorder %v1438_v2, 2  ;;  %v1133_v18 = vsel %vm479_vm8, 1.0, %v1370_v5  ;;  %vm477_vm10 = vcmp.eq.s32.totalorder %v1440_v3, 2  ;;  %s1527_s21 = scalar_lea.vmem %s1580_s5, %s1176_s18  ;;  %s1116_s23 = sshll.u32 %s1590_s22, 2 }
  0x26   : > { %v1134_v19 = vsel %vm480_vm9, 1.0, %v1370_v5  ;;  %vm478_vm11 = vcmp.eq.s32.totalorder %v1444_v4, 2  ;;  %v1131_v20 = vsel %vm477_vm10, 1.0, %v1370_v5  ;;  %vm525_vm12 = vcmp.eq.s32.totalorder %v1436_v1, 3  ;;  %1200 = vmatpush3.bf16.msra.mxu0 %v1331_v30  ;;  %v1338_v62 = vld [vmem:[%s1527_s21] sm:$0xff]   ;;  %v1339_v63 = vld [vmem:[%s1527_s21 + $0x8] sm:$0xff]   ;;  %s350_s26 = scalar_lea.vmem %s1577_s2, %s1116_s23  ;;  %s380_s17 = scalar_lea.vmem %s1582_s7, %s1115_s9 }
  0x27   : > { %v1132_v21 = vsel %vm478_vm11, 1.0, %v1370_v5  ;;  %vm526_vm13 = vcmp.eq.s32.totalorder %v1438_v2, 3  ;;  %v1275_v22 = vpack.i.bf16 %v1134_v19, %v1133_v18  ;;  %vm523_vm14 = vcmp.eq.s32.totalorder %v1440_v3, 3  ;;  %1201 = vmatprep.subr.bf16.mxu0 %v1332_v38  ;;  %1217 = vmatprep.subr.bf16.mxu1 %v1338_v62  ;;  %v1340_v0 = vld [vmem:[%s1527_s21 + $0x10] sm:$0xff]   ;;  %v399_v8 = vld [vmem:[%s350_s26] sm:$0x1] }
  0x28   : > { %1266 = vperm.xlu1 %1259, %v1265_v14   ;;  %vm524_vm15 = vcmp.eq.s32.totalorder %v1444_v4, 3  ;;  %v1270_v24 = vpack.i.bf16 %v1132_v21, %v1131_v20  ;;  %v1137_v25 = vsel %vm525_vm12, 1.0, %v1370_v5  ;;  %v1138_v26 = vsel %vm526_vm13, 1.0, %v1370_v5  ;;  %1218 = vmatpush3.bf16.msra.mxu1 %v1338_v62  ;;  %v489_v9 = vld [vmem:[%s350_s26] sm:$0x2]  ;;  %p360_p12 = scmp.lt.s32.totalorder %s359_s27, 1 }
  0x29   : > { %1255 = vperm.xlu0 %1248, %v1254_v17   ;;  %v1135_v27 = vsel %vm523_vm14, 1.0, %v1370_v5  ;;  %v1136_v28 = vsel %vm524_vm15, 1.0, %v1370_v5  ;;  %vm569_vm0 = vcmp.eq.s32.totalorder %v1436_v1, 4  ;;  %vm570_vm1 = vcmp.eq.s32.totalorder %v1438_v2, 4  ;;  %1219 = vmatprep.subr.bf16.mxu1 %v1339_v63  ;;  %v579_v11 = vld [vmem:[%s350_s26] sm:$0x4] }
  0x2a   : > { %vm567_vm2 = vcmp.eq.s32.totalorder %v1440_v3, 4  ;;  %vm568_vm3 = vcmp.eq.s32.totalorder %v1444_v4, 4  ;;  %v1285_v29 = vpack.i.bf16 %v1138_v26, %v1137_v25  ;;  %v1280_v31 = vpack.i.bf16 %v1136_v28, %v1135_v27  ;;  %1202 = vmatpush3.bf16.msra.mxu0 %v1332_v38  ;;  %v669_v16 = vld [vmem:[%s350_s26] sm:$0x8]  ;;  %s1592_s27 = smov (!%p360_p12, %s359_s27), 1  ;;  %p372_p13 = scmp.lt.s32.totalorder %s371_s11, 1 }
  0x2b   : > { %v1141_v32 = vsel %vm569_vm0, 1.0, %v1370_v5  ;;  %v1142_v33 = vsel %vm570_vm1, 1.0, %v1370_v5  ;;  %vm615_vm4 = vcmp.eq.s32.totalorder %v1436_v1, 5  ;;  %v1139_v34 = vsel %vm567_vm2, 1.0, %v1370_v5  ;;  %1203 = vmatprep.subr.bf16.mxu0 %v1333_v47  ;;  %s362_s10 = scalar_lea.vmem %s1579_s4, %s1592_s27 }
  0x2c   : > { %1276 = vperm.xlu1 %1259, %v1275_v22   ;;  %v1140_v35 = vsel %vm568_vm3, 1.0, %v1370_v5  ;;  %vm616_vm5 = vcmp.eq.s32.totalorder %v1438_v2, 5  ;;  %vm613_vm6 = vcmp.eq.s32.totalorder %v1440_v3, 5  ;;  %vm614_vm7 = vcmp.eq.s32.totalorder %v1444_v4, 5  ;;  %1220 = vmatpush3.bf16.msra.mxu1 %v1339_v63  ;;  %s1594_s11 = smov (!%p372_p13, %s371_s11), 1 }
  0x2d   : > { %1271 = vperm.xlu0 %1248, %v1270_v24   ;;  %v1295_v36 = vpack.i.bf16 %v1142_v33, %v1141_v32  ;;  %v1145_v37 = vsel %vm615_vm4, 1.0, %v1370_v5  ;;  %vm659_vm8 = vcmp.eq.s32.totalorder %v1436_v1, 6  ;;  %v1290_v39 = vpack.i.bf16 %v1140_v35, %v1139_v34  ;;  %1221 = vmatprep.subr.bf16.mxu1 %v1340_v0  ;;  %s374_s14 = scalar_lea.vmem %s1581_s6, %s1594_s11 }
  0x2e   : > { %v1146_v40 = vsel %vm616_vm5, 1.0, %v1370_v5  ;;  %vm660_vm9 = vcmp.eq.s32.totalorder %v1438_v2, 6  ;;  %vm657_vm10 = vcmp.eq.s32.totalorder %v1440_v3, 6  ;;  %v1143_v41 = vsel %vm613_vm6, 1.0, %v1370_v5  ;;  %1204 = vmatpush3.bf16.msra.mxu0 %v1333_v47 }
  0x2f   : > { %v1144_v42 = vsel %vm614_vm7, 1.0, %v1370_v5  ;;  %vm658_vm11 = vcmp.eq.s32.totalorder %v1444_v4, 6  ;;  %v1149_v43 = vsel %vm659_vm8, 1.0, %v1370_v5  ;;  %v1305_v44 = vpack.i.bf16 %v1146_v40, %v1145_v37  ;;  %1205 = vmatprep.subr.bf16.mxu0 %v1334_v51 }
  0x30   : > { %1286 = vperm.xlu1 %1259, %v1285_v29   ;;  %v1150_v45 = vsel %vm660_vm9, 1.0, %v1370_v5  ;;  %v1147_v46 = vsel %vm657_vm10, 1.0, %v1370_v5  ;;  %vm705_vm12 = vcmp.eq.s32.totalorder %v1436_v1, 7  ;;  %v1300_v48 = vpack.i.bf16 %v1144_v42, %v1143_v41  ;;  %v1341_v1 = vld [vmem:[%s1527_s21 + $0x18] sm:$0xff]   ;;  %1222 = vmatpush3.bf16.msra.mxu1 %v1340_v0 }
  0x31   : > { %1281 = vperm.xlu0 %1248, %v1280_v31   ;;  %v1148_v49 = vsel %vm658_vm11, 1.0, %v1370_v5  ;;  %vm706_vm13 = vcmp.eq.s32.totalorder %v1438_v2, 7  ;;  %vm703_vm14 = vcmp.eq.s32.totalorder %v1440_v3, 7  ;;  %vm704_vm15 = vcmp.eq.s32.totalorder %v1444_v4, 7  ;;  %1223 = vmatprep.subr.bf16.mxu1 %v1341_v1  ;;  %v1342_v2 = vld [vmem:[%s1527_s21 + $0x20] sm:$0xff]   ;;  %v1343_v3 = vld [vmem:[%s1527_s21 + $0x28] sm:$0xff]  }
  0x32   : > { %v1315_v50 = vpack.i.bf16 %v1150_v45, %v1149_v43  ;;  %v1310_v52 = vpack.i.bf16 %v1148_v49, %v1147_v46  ;;  %v1153_v53 = vsel %vm705_vm12, 1.0, %v1370_v5  ;;  %v1154_v54 = vsel %vm706_vm13, 1.0, %v1370_v5  ;;  %1206 = vmatpush3.bf16.msra.mxu0 %v1334_v51 }
  0x33   : > { %v1151_v55 = vsel %vm703_vm14, 1.0, %v1370_v5  ;;  %v1152_v56 = vsel %vm704_vm15, 1.0, %v1370_v5  ;;  %v1325_v57 = vpack.i.bf16 %v1154_v54, %v1153_v53  ;;  %1207 = vmatprep.subr.bf16.mxu0 %v1335_v58  ;;  %v421_v4 = vlaneseq }
  0x34   : > { %1296 = vperm.xlu1 %1259, %v1295_v36   ;;  %v1320_v59 = vpack.i.bf16 %v1152_v56, %v1151_v55  ;;  %1224 = vmatpush3.bf16.msra.mxu1 %v1341_v1  ;;  %v400_v12 = vunpack.c.l.bf16 %v399_v8  ;;  %v490_v17 = vunpack.c.l.bf16 %v489_v9  ;;  %v580_v20 = vunpack.c.l.bf16 %v579_v11 }
  0x35   : > { %1291 = vperm.xlu0 %1248, %v1290_v39   ;;  %1225 = vmatprep.subr.bf16.mxu1 %v1342_v2  ;;  %v422_v6 = vshrl.u32 %v421_v4, 7  ;;  %v670_v24 = vunpack.c.l.bf16 %v669_v16 }
  0x36   : > { %1208 = vmatpush3.bf16.msra.mxu0 %v1335_v58 }
  0x37   : > { %1209 = vmatprep.subr.bf16.mxu0 %v1336_v60  ;;  %v423_v13 = vsub.s32 0, %v422_v6  ;;  %v467_v14 = vsub.s32 1, %v422_v6  ;;  %v513_v18 = vsub.s32 2, %v422_v6  ;;  %v557_v19 = vsub.s32 3, %v422_v6 }
  0x38   : > { %1306 = vperm.xlu1 %1259, %v1305_v44   ;;  %1226 = vmatpush3.bf16.msra.mxu1 %v1342_v2  ;;  %v603_v21 = vsub.s32 4, %v422_v6  ;;  %v647_v22 = vsub.s32 5, %v422_v6  ;;  %v693_v25 = vsub.s32 6, %v422_v6  ;;  %v737_v26 = vsub.s32 7, %v422_v6 }
  0x39   : > { %1301 = vperm.xlu0 %1248, %v1300_v48   ;;  %1227 = vmatprep.subr.bf16.mxu1 %v1343_v3  ;;  %v424_v27 = vrot.slane %v400_v12, %v423_v13  ;;  %v468_v28 = vrot.slane %v400_v12, %v467_v14  ;;  %v514_v34 = vrot.slane %v490_v17, %v513_v18 }
  0x3a   : > { %1210 = vmatpush3.bf16.msra.mxu0 %v1336_v60  ;;  %v558_v35 = vrot.slane %v490_v17, %v557_v19  ;;  %v604_v38 = vrot.slane %v580_v20, %v603_v21  ;;  %v1539_v39 = vrot.slane %v580_v20, %v647_v22  ;;  %v1541_v43 = vrot.slane %v670_v24, %v693_v25 }
  0x3b   : > { %1211 = vmatprep.subr.bf16.mxu0 %v1337_v61  ;;  %v1543_v44 = vrot.slane %v670_v24, %v737_v26 }
  0x3c   : > { %1316 = vperm.xlu1 %1259, %v1315_v50   ;;  %1228 = vmatpush3.bf16.msra.mxu1 %v1343_v3 }
  0x3d   : > { %1311 = vperm.xlu0 %1248, %v1310_v52  }
  0x3e   : > { %1212 = vmatpush3.bf16.msra.mxu0 %v1337_v61 }
  0x40   : > { %1326 = vperm.xlu1 %1259, %v1325_v57  }
  0x41   : > { %1321 = vperm.xlu0 %1248, %v1320_v59  }
  0xa3   : > { %v1262_v5 = vpop.permute.xlu1 %1261 }
  0xa4   : > { %v1251_v7 = vpop.permute.xlu0 %1250  ;;  %v1264_v36 = vunpack.i.h.bf16 %v1262_v5  ;;  %v1263_v37 = vunpack.i.l.bf16 %v1262_v5 }
  0xa5   : > { %v1253_v40 = vunpack.i.h.bf16 %v1251_v7  ;;  %v1252_v41 = vunpack.i.l.bf16 %v1251_v7 }
  0xa6   : > { %v428_v54 = vmul.f32 %v1264_v36, %v424_v27  ;;  %v427_v55 = vmul.f32 %v1263_v37, %v424_v27 }
  0xa7   : > { %v1267_v10 = vpop.permute.xlu1 %1266  ;;  %v426_v58 = vmul.f32 %v1253_v40, %v424_v27  ;;  %v425_v59 = vmul.f32 %v1252_v41, %v424_v27 }
  0xa8   : > { %v1256_v15 = vpop.permute.xlu0 %1255  ;;  %v1269_v29 = vunpack.i.h.bf16 %v1267_v10  ;;  %v1268_v30 = vunpack.i.l.bf16 %v1267_v10 }
  0xa9   : > { %v1258_v32 = vunpack.i.h.bf16 %v1256_v15  ;;  %v1257_v33 = vunpack.i.l.bf16 %v1256_v15 }
  0xaa   : > { %v472_v45 = vmul.f32 %v1269_v29, %v468_v28  ;;  %v471_v46 = vmul.f32 %v1268_v30, %v468_v28 }
  0xab   : > { %v1277_v23 = vpop.permute.xlu1 %1276  ;;  %v470_v50 = vmul.f32 %v1258_v32, %v468_v28  ;;  %v469_v51 = vmul.f32 %v1257_v33, %v468_v28 }
  0xac   : > { %v1272_v31 = vpop.permute.xlu0 %1271  ;;  %v1279_v47 = vunpack.i.h.bf16 %v1277_v23  ;;  %v1278_v48 = vunpack.i.l.bf16 %v1277_v23  ;;  %v475_v63 = vadd.f32 %v471_v46, %v427_v55  ;;  %v476_v0 = vadd.f32 %v472_v45, %v428_v54 }
  0xad   : > { %v1274_v52 = vunpack.i.h.bf16 %v1272_v31  ;;  %v1273_v53 = vunpack.i.l.bf16 %v1272_v31  ;;  %v473_v4 = vadd.f32 %v469_v51, %v425_v59  ;;  %v474_v5 = vadd.f32 %v470_v50, %v426_v58 }
  0xae   : > { %v518_v1 = vmul.f32 %v1279_v47, %v514_v34  ;;  %v517_v2 = vmul.f32 %v1278_v48, %v514_v34 }
  0xaf   : > { %v1287_v42 = vpop.permute.xlu1 %1286  ;;  %v516_v6 = vmul.f32 %v1274_v52, %v514_v34  ;;  %v515_v7 = vmul.f32 %v1273_v53, %v514_v34 }
  0xb0   : > { %v1282_v49 = vpop.permute.xlu0 %1281  ;;  %v1289_v56 = vunpack.i.h.bf16 %v1287_v42  ;;  %v1288_v57 = vunpack.i.l.bf16 %v1287_v42  ;;  %v521_v17 = vadd.f32 %v517_v2, %v475_v63  ;;  %v522_v18 = vadd.f32 %v518_v1, %v476_v0 }
  0xb1   : > { %v1284_v60 = vunpack.i.h.bf16 %v1282_v49  ;;  %v1283_v61 = vunpack.i.l.bf16 %v1282_v49  ;;  %v519_v22 = vadd.f32 %v515_v7, %v473_v4  ;;  %v520_v23 = vadd.f32 %v516_v6, %v474_v5 }
  0xb2   : > { %v562_v8 = vmul.f32 %v1289_v56, %v558_v35  ;;  %v561_v9 = vmul.f32 %v1288_v57, %v558_v35 }
  0xb3   : > { %v1297_v62 = vpop.permute.xlu1 %1296  ;;  %v560_v12 = vmul.f32 %v1284_v60, %v558_v35  ;;  %v559_v13 = vmul.f32 %v1283_v61, %v558_v35 }
  0xb4   : > { %v1292_v3 = vpop.permute.xlu0 %1291  ;;  %v1299_v10 = vunpack.i.h.bf16 %v1297_v62  ;;  %v1298_v11 = vunpack.i.l.bf16 %v1297_v62  ;;  %v565_v26 = vadd.f32 %v561_v9, %v521_v17  ;;  %v566_v27 = vadd.f32 %v562_v8, %v522_v18 }
  0xb5   : > { %v1294_v14 = vunpack.i.h.bf16 %v1292_v3  ;;  %v1293_v15 = vunpack.i.l.bf16 %v1292_v3  ;;  %v563_v30 = vadd.f32 %v559_v13, %v519_v22  ;;  %v564_v31 = vadd.f32 %v560_v12, %v520_v23  ;;  %v1344_v13 = vld [vmem:[%s1527_s21 + $0x30] sm:$0xff]  }
  0xb6   : > { %v608_v28 = vmul.f32 %v1299_v10, %v604_v38  ;;  %v607_v29 = vmul.f32 %v1298_v11, %v604_v38  ;;  %1229 = vmatprep.subr.bf16.mxu1 %v1344_v13 }
  0xb7   : > { %v1307_v16 = vpop.permute.xlu1 %1306  ;;  %v606_v32 = vmul.f32 %v1294_v14, %v604_v38  ;;  %v605_v33 = vmul.f32 %v1293_v15, %v604_v38  ;;  %1230 = vmatpush3.bf16.msra.mxu1 %v1344_v13  ;;  %v1345_v14 = vld [vmem:[%s1527_s21 + $0x38] sm:$0xff]  }
  0xb8   : > { %v1309_v19 = vunpack.i.h.bf16 %v1307_v16  ;;  %v1308_v20 = vunpack.i.l.bf16 %v1307_v16  ;;  %v1302_v21 = vpop.permute.xlu0 %1301  ;;  %v611_v48 = vadd.f32 %v607_v29, %v565_v26  ;;  %v612_v49 = vadd.f32 %v608_v28, %v566_v27  ;;  %1231 = vmatprep.subr.bf16.mxu1 %v1345_v14  ;;  %v1164_v29 = vld [vmem:[%s374_s14] ss:$0 sm:$0xff] }
  0xb9   : > { %v1304_v24 = vunpack.i.h.bf16 %v1302_v21  ;;  %v1303_v25 = vunpack.i.l.bf16 %v1302_v21  ;;  %v609_v51 = vadd.f32 %v605_v33, %v563_v30  ;;  %v610_v52 = vadd.f32 %v606_v32, %v564_v31 }
  0xba   : > { %v652_v35 = vmul.f32 %v1309_v19, %v1539_v39  ;;  %v651_v36 = vmul.f32 %v1308_v20, %v1539_v39 }
  0xbb   : > { %v1317_v34 = vpop.permute.xlu1 %1316  ;;  %v650_v42 = vmul.f32 %v1304_v24, %v1539_v39  ;;  %v649_v45 = vmul.f32 %v1303_v25, %v1539_v39  ;;  %1232 = vmatpush3.bf16.msra.mxu1 %v1345_v14 }
  0xbc   : > { %v1319_v37 = vunpack.i.h.bf16 %v1317_v34  ;;  %v1318_v40 = vunpack.i.l.bf16 %v1317_v34  ;;  %v1312_v41 = vpop.permute.xlu0 %1311  ;;  %v655_v56 = vadd.f32 %v651_v36, %v611_v48  ;;  %v656_v57 = vadd.f32 %v652_v35, %v612_v49 }
  0xbd   : > { %v1314_v46 = vunpack.i.h.bf16 %v1312_v41  ;;  %v1313_v47 = vunpack.i.l.bf16 %v1312_v41  ;;  %v653_v60 = vadd.f32 %v649_v45, %v609_v51  ;;  %v654_v61 = vadd.f32 %v650_v42, %v610_v52 }
  0xbe   : > { %v698_v50 = vmul.f32 %v1319_v37, %v1541_v43  ;;  %v697_v38 = vmul.f32 %v1318_v40, %v1541_v43 }
  0xbf   : > { %v696_v53 = vmul.f32 %v1314_v46, %v1541_v43  ;;  %v695_v54 = vmul.f32 %v1313_v47, %v1541_v43  ;;  %v1327_v55 = vpop.permute.xlu1 %1326 }
  0xc0   : > { %v1329_v58 = vunpack.i.h.bf16 %v1327_v55  ;;  %v1328_v59 = vunpack.i.l.bf16 %v1327_v55  ;;  %v1322_v39 = vpop.permute.xlu0 %1321  ;;  %v701_v0 = vadd.f32 %v697_v38, %v655_v56  ;;  %v702_v1 = vadd.f32 %v698_v50, %v656_v57 }
  0xc1   : > { %v1324_v62 = vunpack.i.h.bf16 %v1322_v39  ;;  %v1323_v63 = vunpack.i.l.bf16 %v1322_v39  ;;  %v699_v5 = vadd.f32 %v695_v54, %v653_v60  ;;  %v700_v6 = vadd.f32 %v696_v53, %v654_v61 }
  0xc2   : > { %v742_v2 = vmul.f32 %v1329_v58, %v1543_v44  ;;  %v741_v3 = vmul.f32 %v1328_v59, %v1543_v44 }
  0xc3   : > { %v740_v43 = vmul.f32 %v1324_v62, %v1543_v44  ;;  %v739_v4 = vmul.f32 %v1323_v63, %v1543_v44  ;;  %v1155_v44 = vld [vmem:[%s362_s10] ss:$0 sm:$0xff] }
  0xc4   : > { %v745_v7 = vadd.f32 %v741_v3, %v701_v0  ;;  %v746_v8 = vadd.f32 %v742_v2, %v702_v1 }
  0xc5   : > { %v743_v9 = vadd.f32 %v739_v4, %v699_v5  ;;  %v744_v10 = vadd.f32 %v740_v43, %v700_v6 }
  0xc6   : > { %v748_v11 = vpack.c.bf16 %v746_v8, %v745_v7 }
  0xc7   : > { %v747_v12 = vpack.c.bf16 %v744_v10, %v743_v9 }
  0xc9   : > { %1213 = vmatprep.mubr.bf16.mxu0 %v747_v12 }
  0xca   : > { %1214 = vmatmul.mubr.bf16.vlgmr.msra.gmra.mrb[0].mxu0 %v748_v11 }
 0x19d   : > { %v1215_v15 = vpop.f32.mrb[0].mxu0 }
 0x19e   : > { %v863_v16 = vadd.f32 %v1215_v15, %v1155_v44  ;;  %v854_v17 = vpop.f32.mrb[1].mxu0 }
 0x19f   : > { %v855_v18 = vadd.f32 %v1155_v44, %v854_v17  ;;  %v1216_v19 = vpop.f32.mrb[2].mxu0 }
 0x1a0   : > { %v866_v20 = vadd.f32 %v1216_v19, %v1155_v44  ;;  %v857_v21 = vpop.f32.mrb[3].mxu0  ;;  %v871_v23 = vmax.f32 %v863_v16, 0.0 }
 0x1a1   : > { %v858_v22 = vadd.f32 %v1155_v44, %v857_v21  ;;  %v869_v25 = vmax.f32 %v855_v18, 0.0 }
 0x1a2   : > { %v872_v24 = vmax.f32 %v866_v20, 0.0 }
 0x1a3   : > { %v870_v26 = vmax.f32 %v858_v22, 0.0 }
 0x1a4   : > { %v874_v27 = vpack.c.bf16 %v872_v24, %v871_v23 }
 0x1a5   : > { %v873_v28 = vpack.c.bf16 %v870_v26, %v869_v25 }
 0x1a7   : > { %1233 = vmatprep.mubr.bf16.mxu1 %v873_v28 }
 0x1a8   : > { %1234 = vmatmul.mubr.bf16.vlgmr.msra.gmra.mrb[0].mxu1 %v874_v27 }
 0x27b   : > { %v1235_v30 = vpop.f32.mrb[0].mxu1 }
 0x27c   : > { %v980_v31 = vpop.f32.mrb[1].mxu1  ;;  %v989_v36 = vadd.f32 %v1235_v30, %v1164_v29 }
 0x27d   : > { %v981_v32 = vadd.f32 %v1164_v29, %v980_v31  ;;  %v1236_v33 = vpop.f32.mrb[2].mxu1 }
 0x27e   : > { %v983_v34 = vpop.f32.mrb[3].mxu1  ;;  %v992_v37 = vadd.f32 %v1236_v33, %v1164_v29  ;;  %997 = vst [vmem:[%s380_s17 + $0x10] sm:$0xff] %v989_v36 }
 0x27f   : > { %995 = vst [vmem:[%s380_s17] sm:$0xff] %v981_v32  ;;  %v984_v35 = vadd.f32 %v1164_v29, %v983_v34 }
 0x280   : > { %998 = vst [vmem:[%s380_s17 + $0x18] sm:$0xff] %v992_v37 }
 0x281   : > { %996 = vst [vmem:[%s380_s17 + $0x8] sm:$0xff] %v984_v35 }
 0x282 PF: > { %s23_s29 = sadd.s32 1, %s1366_s29  }
 0x283   : > { %p20_p0 = scmp.ge.s32.totalorder %s23_s29, 4  }
 0x285   :  { %22 = sbr.rel (!%p20_p0) target bundleno = 16 (0x10), region = 89 }

</bundles_post_ra>
